<compile_context>
chip_gen: v7x
topology: tpu7x:2x2x1
jax: 0.10.0
libtpu: 0.0.40
codegen_flags: <defaults>
</compile_context>

<pallas_src>
import numpy as np
import jax
import jax.numpy as jnp
from jax.experimental import pallas as pl
from jax.experimental.pallas import tpu as pltpu


# ----------------------------------------------------------------------------
# Pallas kernel
# ----------------------------------------------------------------------------
def _synthesis_input_kernel(grid_ref, params_ref, wsc_ref, out_ref):
    # grid_ref   : [2, THW]    row 0 = x coords, row 1 = y coords (shared)
    # params_ref : [1, C, 4]   cols = [2pi*fx, 2pi*fy, 2pi*phase, amplitude]
    # wsc_ref    : [C, C]      = weight / sqrt(C)   (resident across the grid)
    # out_ref    : [1, C, THW]
    gx = grid_ref[0:1, :]                   # [1, THW]
    gy = grid_ref[1:2, :]                   # [1, THW]

    prm = params_ref[0]                     # [C, 4]
    tfx = prm[:, 0:1]                       # [C, 1]
    tfy = prm[:, 1:2]                       # [C, 1]
    tph = prm[:, 2:3]                       # [C, 1]
    amp = prm[:, 3:4]                       # [C, 1]

    # VPU broadcast math (+ EUP sin) replaces the lane-sparse K=2 MXU matmul.
    x = jnp.sin(tfx * gx + tfy * gy + tph) * amp                        # [C, THW]

    # Channel-mixing matmul on the MXU, f32 accumulation.
    y = jnp.dot(wsc_ref[...], x, preferred_element_type=jnp.float32)    # [C, THW]
    out_ref[0] = y.astype(out_ref.dtype)


def _pick_hw_tile(hw, c):
    """Largest lane-dense HW tile (multiple of 128) that divides HW and keeps
    the THW-scaled VMEM working set (sinusoid tile + 2x-buffered f32 output
    tile) within ~16 MiB, capped at 2048 lanes.  Falls back to the full extent
    (always legal as a full-dim block) when HW is not a multiple of 128."""
    if hw % 128 != 0:
        return hw
    budget_bytes = 16 * 1024 * 1024
    per_lane_bytes = 12 * max(int(c), 8)          # 3 x f32 [C]-columns per lane
    cap = min(2048, hw, (budget_bytes // per_lane_bytes) // 128 * 128)
    cap = max(cap, 128)
    best = 128
    for t in range(128, cap + 1, 128):
        if hw % t == 0:
            best = t
    return best


def synthesis_input_pallas(grid_xy, params, weight_scaled, *, out_dtype=jnp.float32):
    """grid_xy: [2, HW] (x row / y row), params: [B, C, 4]
    (2pi*fx, 2pi*fy, 2pi*phase, amp), weight_scaled: [C, C] = weight/sqrt(C).
    Returns [B, C, HW]."""
    B, C, _ = params.shape
    HW = grid_xy.shape[1]
    THW = _pick_hw_tile(HW, C)
    n_hw = HW // THW

    cost = pl.CostEstimate(
        flops=int(2 * B * HW * C * C + 6 * B * HW * C),
        transcendentals=int(B * HW * C),
        bytes_accessed=int(4 * (B * C * HW + C * C + 2 * HW + B * C * 4)),
    )

    return pl.pallas_call(
        _synthesis_input_kernel,
        out_shape=jax.ShapeDtypeStruct((B, C, HW), out_dtype),
        grid_spec=pltpu.PrefetchScalarGridSpec(
            num_scalar_prefetch=0,
            grid=(B, n_hw),
            in_specs=[
                pl.BlockSpec((2, THW), lambda b, t: (0, t)),     # grid coords
                pl.BlockSpec((1, C, 4), lambda b, t: (b, 0, 0)), # packed params
                pl.BlockSpec((C, C), lambda b, t: (0, 0)),       # weight/sqrt(C)
            ],
            out_specs=pl.BlockSpec((1, C, THW), lambda b, t: (b, 0, t)),
        ),
        compiler_params=pltpu.CompilerParams(
            dimension_semantics=("parallel", "parallel")),
        cost_estimate=cost,
    )(grid_xy, params, weight_scaled)


# ----------------------------------------------------------------------------
# Module: deterministic parameter init + forward (glue in JAX, hot path Pallas)
# ----------------------------------------------------------------------------
class SynthesisInputPallas:
    def __init__(self, w_dim, channels, size, sampling_rate, bandwidth,
                 offset_scale='0,0', bound_len=0.5, wo_transform=False,
                 key=jax.random.PRNGKey(0)):
        self.w_dim = w_dim
        self.channels = channels
        self.size = np.broadcast_to(np.asarray(size), [2])
        self.sampling_rate = float(sampling_rate)
        self.bandwidth = float(bandwidth)
        self.wo_transform = wo_transform
        self.x_offset_scale, self.y_offset_scale = map(float, offset_scale.split(','))
        self.bound_len = float(bound_len)
        assert self.sampling_rate / 2.0 != self.bandwidth, \
            "sampling_rate/2 == bandwidth would divide by zero in amplitudes"

        k_f, k_p, k_w = jax.random.split(key, 3)
        freqs = jax.random.normal(k_f, (channels, 2), jnp.float32)
        radii = jnp.sqrt(jnp.sum(jnp.square(freqs), axis=1, keepdims=True))
        freqs = freqs / (radii * jnp.exp(jnp.square(radii)) ** 0.25)
        freqs = freqs * self.bandwidth
        phases = jax.random.uniform(k_p, (channels,), jnp.float32) - 0.5
        self.freqs = freqs                       # buffer [C, 2]
        self.phases = phases                     # buffer [C]
        self.weight = jax.random.normal(k_w, (channels, channels), jnp.float32)
        self.transform = jnp.eye(3, dtype=jnp.float32)  # buffer

        if not wo_transform:
            # FullyConnectedLayer(w_dim, 4, weight_init=0, bias_init=[1,0,0,0])
            self.affine_lr_multiplier = 1.0
            self.affine_weight = jnp.zeros((4, w_dim), jnp.float32)  # weight_init=0
            self.affine_bias = jnp.asarray([1.0, 0.0, 0.0, 0.0], jnp.float32)
            self.affine_weight_gain = 1.0 / np.sqrt(w_dim)

        # Deterministic offsets. Defaults: bound_len=0.5 -> offset_len=0,
        # offset_scale='0,0' -> both scales 0, so dx = dy = 0 exactly.
        # TODO(synk): the PyTorch module uses python `random.random()` for the
        # offsets when bound_len < 0.5; here they are fixed to 0 for determinism.
        offset_len = 1.0 - 2.0 * self.bound_len
        self.x_offset = 0.0 * offset_len * self.x_offset_scale
        self.y_offset = 0.0 * offset_len * self.y_offset_scale

    # ---- tiny glue --------------------------------------------------------
    def _affine(self, w):
        wmat = self.affine_weight * (self.affine_weight_gain *
                                     self.affine_lr_multiplier)
        b = self.affine_bias * self.affine_lr_multiplier
        return w @ wmat.T + b[None, :]

    def _per_batch_params(self, w):
        """Returns (freqs_b [Bp,C,2], phases_b [Bp,C], amps_b [Bp,C])."""
        B = w.shape[0]
        transforms = self.transform[None]                 # [1,3,3]
        freqs = self.freqs[None]                          # [1,C,2]
        phases = self.phases[None]                        # [1,C]
        if not self.wo_transform:
            t = self._affine(w)                           # [B,4]
            t = t / jnp.linalg.norm(t[:, :2], axis=1, keepdims=True)
            eye3 = jnp.broadcast_to(jnp.eye(3, dtype=jnp.float32), (B, 3, 3))
            m_r = eye3.at[:, 0, 0].set(t[:, 0]).at[:, 0, 1].set(-t[:, 1]) \
                      .at[:, 1, 0].set(t[:, 1]).at[:, 1, 1].set(t[:, 0])
            m_t = eye3.at[:, 0, 2].set(-t[:, 2]).at[:, 1, 2].set(-t[:, 3])
            transforms = m_r @ m_t @ transforms           # [B,3,3]
        phases_b = phases + jnp.squeeze(freqs @ transforms[:, :2, 2:], -1)
        freqs_b = freqs @ transforms[:, :2, :2]
        amps_b = jnp.clip(
            1.0 - (jnp.linalg.norm(freqs_b, axis=2) - self.bandwidth)
            / (self.sampling_rate / 2.0 - self.bandwidth), 0.0, 1.0)
        return freqs_b, phases_b, amps_b

    def _grid_coords(self):
        """Returns flattened affine_grid coordinates as [2, HW] (x row, y row)."""
        W = int(self.size[0]); H = int(self.size[1])
        theta00 = self.bound_len * float(self.size[0]) / self.sampling_rate
        theta11 = self.bound_len * float(self.size[1]) / self.sampling_rate
        xs = (2.0 * jnp.arange(W, dtype=jnp.float32) + 1.0) / W - 1.0
        ys = (2.0 * jnp.arange(H, dtype=jnp.float32) + 1.0) / H - 1.0
        gx = theta00 * xs + self.x_offset                 # [W]
        gy = theta11 * ys + self.y_offset                 # [H]
        gx_flat = jnp.broadcast_to(gx[None, :], (H, W)).reshape(H * W)
        gy_flat = jnp.broadcast_to(gy[:, None], (H, W)).reshape(H * W)
        return jnp.stack([gx_flat, gy_flat], axis=0)      # [2, HW]

    # ---- forward ----------------------------------------------------------
    def __call__(self, w):
        B = w.shape[0]
        C = self.channels
        W = int(self.size[0]); H = int(self.size[1])

        freqs_b, phases_b, amps_b = self._per_batch_params(w)
        Bp = freqs_b.shape[0]                             # 1 if wo_transform

        grid_xy = self._grid_coords()                     # [2, HW]

        # Fold 2*pi into the per-batch params (O(B*C), trivial in the wrapper).
        two_pi = jnp.float32(2.0 * np.pi)
        params = jnp.stack([two_pi * freqs_b[:, :, 0],
                            two_pi * freqs_b[:, :, 1],
                            two_pi * phases_b,
                            amps_b], axis=-1)             # [Bp, C, 4]
        wsc = self.weight / np.sqrt(C)                    # [C, C]

        y = synthesis_input_pallas(grid_xy, params, wsc)  # [Bp, C, HW]
        y = y.reshape(Bp, C, H, W)                        # NCHW, no transpose
        if self.wo_transform and Bp != B:
            y = jnp.broadcast_to(y, (B, C, H, W))         # matches torch repeat
        return y

    # Pure-JAX reference of the whole forward (for correctness check).
    def reference(self, w):
        B = w.shape[0]
        C = self.channels
        W = int(self.size[0]); H = int(self.size[1])
        freqs_b, phases_b, amps_b = self._per_batch_params(w)
        grid_xy = self._grid_coords()                     # [2, HW]
        grid = jnp.stack([grid_xy[0].reshape(H, W),
                          grid_xy[1].reshape(H, W)], axis=-1)  # [H,W,2]
        x = jnp.einsum('hwk,bck->bhwc', grid, freqs_b)
        x = jnp.sin((x + phases_b[:, None, None, :]) * (2.0 * np.pi))
        x = x * amps_b[:, None, None, :]
        x = x @ (self.weight / np.sqrt(C)).T
        x = jnp.transpose(x, (0, 3, 1, 2))
        if self.wo_transform and x.shape[0] != B:
            x = jnp.broadcast_to(x, (B, C, H, W))
        return x


if __name__ == "__main__":
    key = jax.random.PRNGKey(0)
    k_params, k_w, k_aff = jax.random.split(key, 3)

    # Small shapes consistent with the module.
    batch = 2
    w_dim = 32
    channels = 16
    size = 16             # -> H = W = 16, HW = 256 (lane-dense output tiles)
    sampling_rate = 16.0
    bandwidth = 2.0

    mod = SynthesisInputPallas(w_dim, channels, size, sampling_rate, bandwidth,
                               offset_scale='0,0', bound_len=0.5,
                               wo_transform=False, key=k_params)
    # Perturb the (spec-initialized-to-zero) affine weight so the test actually
    # exercises per-batch rotation/translation of the Fourier features.
    mod.affine_weight = 0.1 * jax.random.normal(k_aff, (4, w_dim), jnp.float32)

    w = jax.random.normal(k_w, (batch, w_dim), jnp.float32)

    out = jax.block_until_ready(mod(w))
    assert out.shape == (batch, channels, size, size), out.shape

    ref = jax.block_until_ready(mod.reference(w))
    np.testing.assert_allclose(np.asarray(out), np.asarray(ref),
                               rtol=1e-4, atol=1e-4)
    print("KERNEL_OK")
</pallas_src>

<mosaic_0001>
module attributes {stable_mosaic.version = 11 : i64} {
  func.func @_synthesis_input_kernel(%arg0: i32, %arg1: i32, %arg2: memref<2x256xf32, #tpu.memory_space<vmem>>, %arg3: memref<1x16x4xf32, #tpu.memory_space<vmem>>, %arg4: memref<16x16xf32, #tpu.memory_space<vmem>>, %arg5: memref<1x16x256xf32, #tpu.memory_space<vmem>>) attributes {dimension_semantics = [#tpu.dimension_semantics<parallel>, #tpu.dimension_semantics<parallel>], iteration_bounds = array<i64: 2, 1>, scalar_prefetch = 0 : i64, scratch_operands = 0 : i64, tpu.core_type = #tpu.core_type<tc>, window_params = [{transform_indices = @transform_0, window_bounds = array<i64: 2, 256>}, {transform_indices = @transform_1, window_bounds = array<i64: 1, 16, 4>}, {pipeline_mode = #tpu.pipeline_mode<synchronous>, transform_indices = @transform_2, window_bounds = array<i64: 16, 16>}, {transform_indices = @transform_3, window_bounds = array<i64: 1, 16, 256>}]} {
    %c0 = arith.constant 0 : index
    %c0_0 = arith.constant 0 : index
    %0 = vector.load %arg2[%c0, %c0_0] : memref<2x256xf32, #tpu.memory_space<vmem>>, vector<1x256xf32>
    %c1 = arith.constant 1 : index
    %c0_1 = arith.constant 0 : index
    %1 = vector.load %arg2[%c1, %c0_1] : memref<2x256xf32, #tpu.memory_space<vmem>>, vector<1x256xf32>
    %c0_2 = arith.constant 0 : index
    %c0_3 = arith.constant 0 : index
    %c0_4 = arith.constant 0 : index
    %2 = vector.load %arg3[%c0_2, %c0_3, %c0_4] : memref<1x16x4xf32, #tpu.memory_space<vmem>>, vector<1x16x4xf32>
    %3 = vector.shape_cast %2 : vector<1x16x4xf32> to vector<16x4xf32>
    %4 = vector.extract_strided_slice %3 {offsets = [0, 0], sizes = [16, 1], strides = [1, 1]} : vector<16x4xf32> to vector<16x1xf32>
    %5 = vector.extract_strided_slice %3 {offsets = [0, 1], sizes = [16, 1], strides = [1, 1]} : vector<16x4xf32> to vector<16x1xf32>
    %6 = vector.extract_strided_slice %3 {offsets = [0, 2], sizes = [16, 1], strides = [1, 1]} : vector<16x4xf32> to vector<16x1xf32>
    %7 = vector.extract_strided_slice %3 {offsets = [0, 3], sizes = [16, 1], strides = [1, 1]} : vector<16x4xf32> to vector<16x1xf32>
    %8 = vector.broadcast %4 : vector<16x1xf32> to vector<16x256xf32>
    %9 = vector.broadcast %0 : vector<1x256xf32> to vector<16x256xf32>
    %10 = arith.mulf %8, %9 : vector<16x256xf32>
    %11 = vector.broadcast %5 : vector<16x1xf32> to vector<16x256xf32>
    %12 = vector.broadcast %1 : vector<1x256xf32> to vector<16x256xf32>
    %13 = arith.mulf %11, %12 : vector<16x256xf32>
    %14 = arith.addf %10, %13 : vector<16x256xf32>
    %15 = vector.broadcast %6 : vector<16x1xf32> to vector<16x256xf32>
    %16 = arith.addf %14, %15 : vector<16x256xf32>
    %17 = math.sin %16 : vector<16x256xf32>
    %18 = vector.broadcast %7 : vector<16x1xf32> to vector<16x256xf32>
    %19 = arith.mulf %17, %18 : vector<16x256xf32>
    %c0_5 = arith.constant 0 : index
    %c0_6 = arith.constant 0 : index
    %20 = vector.load %arg4[%c0_5, %c0_6] : memref<16x16xf32, #tpu.memory_space<vmem>>, vector<16x16xf32>
    %cst = arith.constant dense<0.000000e+00> : vector<16x256xf32>
    %21 = tpu.matmul %20, %19, %cst {dimension_numbers = #tpu.dot_dimension_numbers<[1], [0], [0], [1], [0, 0, 1, 1], [], []>} : vector<16x16xf32>, vector<16x256xf32>, vector<16x256xf32> -> vector<16x256xf32>
    %c0_7 = arith.constant 0 : index
    %c0_8 = arith.constant 0 : index
    %c0_9 = arith.constant 0 : index
    %22 = vector.load %arg5[%c0_7, %c0_8, %c0_9] : memref<1x16x256xf32, #tpu.memory_space<vmem>>, vector<1x16x256xf32>
    %23 = vector.shape_cast %22 : vector<1x16x256xf32> to vector<16x256xf32>
    %24 = vector.shape_cast %21 : vector<16x256xf32> to vector<1x16x256xf32>
    tpu.vector_store %arg5[%c0_7, %c0_8, %c0_9], %24 {strides = array<i32>} : memref<1x16x256xf32, #tpu.memory_space<vmem>>, vector<1x16x256xf32>,
    return
  }
  func.func @transform_0(%arg0: i32, %arg1: i32) -> (i32, i32) {
    %c0_i32 = arith.constant 0 : i32
    %c0_i32_0 = arith.constant 0 : i32
    return %c0_i32, %arg1 : i32, i32
  }
  func.func @transform_1(%arg0: i32, %arg1: i32) -> (i32, i32, i32) {
    %c0_i32 = arith.constant 0 : i32
    %c0_i32_0 = arith.constant 0 : i32
    %c0_i32_1 = arith.constant 0 : i32
    return %arg0, %c0_i32, %c0_i32_0 : i32, i32, i32
  }
  func.func @transform_2(%arg0: i32, %arg1: i32) -> (i32, i32) {
    %c0_i32 = arith.constant 0 : i32
    %c0_i32_0 = arith.constant 0 : i32
    %c0_i32_1 = arith.constant 0 : i32
    return %c0_i32, %c0_i32_0 : i32, i32
  }
  func.func @transform_3(%arg0: i32, %arg1: i32) -> (i32, i32, i32) {
    %c0_i32 = arith.constant 0 : i32
    %c0_i32_0 = arith.constant 0 : i32
    return %arg0, %c0_i32, %arg1 : i32, i32, i32
  }
}

</mosaic_0001>

<bundles_post_ra>
// kernel: tpu_custom_call.1
= control target key start
LH: loop header
LB: loop body
LE: loop exit
PB: predicated region body
PF: predicated region fallthrough
CT: control target
= control target key end

     0   :  { %8 = vsyncpa [#allocation3], 0  ;;  %s1649_s0 = inlined_call_operand.vmem [shape: f32[2,256], index: 0, kind: input, shape index: {}]   ;;  %s1650_s1 = inlined_call_operand.vmem [shape: f32[2,16,4], index: 1, kind: input, shape index: {}]   ;;  %s1651_s2 = inlined_call_operand.vmem [shape: f32[16,16], index: 2, kind: input, shape index: {}]   ;;  %s1652_s3 = inlined_call_operand.hbm [shape: f32[2,16,256], index: 3, kind: output, shape index: {}]  }
   0x1   :  { %10 = vsyncpa [#allocation3 + $0x1], 0  ;;  %s1158_s12 = smov 0   ;;  %s1160_s13 = smov 0  }
   0x2   :  { %s1162_s14 = smov 0   ;;  %s1164_s15 = smov 0  }
   0x3   :  { %s1166_s16 = smov 0   ;;  %s1168_s17 = smov 0  }
   0x4 LB: > { %s897_s18 = sadd.s32 4294967295, %s1122_s17   ;;  %s898_s19 = sadd.s32 4294967294, %s1122_s17   ;;  %s1122_s17 = sphi %s1168_s17, %s16_s17   ;;  %s1118_s16 = sphi %s1166_s16, %s1667_s16   ;;  %s1114_s15 = sphi %s1164_s15, %s1666_s15   ;;  %s1110_s14 = sphi %s1162_s14, %s1665_s14   ;;  %s1106_s13 = sphi %s1160_s13, %s1664_s13   ;;  %s1102_s12 = sphi %s1158_s12, %s1663_s12  }
   0x5   : > { %s28_s20 = sadd.s32 1, %s1118_s16  ;;  %s110_s21 = sadd.s32 1, %s1110_s14 }
   0x6   : > { %p30_p0 = scmp.ge.s32.totalorder %s28_s20, 2  ;;  %p120_p1 = scmp.ne.s32.totalorder %s1110_s14, %s1106_s13 }
   0x7   : > { %p121_p2 = scmp.eq.s32.totalorder %s897_s18, 1  ;;  %p126_p3 = scmp.ne.s32.totalorder %s1106_s13, %s1102_s12 }
   0x8   : > { %s1669_s20 = smov (%p30_p0, %s28_s20), 0  ;;  %p127_p5 = scmp.eq.s32.totalorder %s898_s19, 1 }
   0x9   : > { %p1198_p4 = por %p121_p2, %p120_p1  ;;  %s105_s23 = ssub.s32 %s1118_s16, %s1669_s20 }
   0xa   : > { %p902_p6 = scmp.ge.s32.totalorder %s1122_s17, 1  ;;  %p108_p7 = scmp.eq.s32.totalorder %s105_s23, 0 }
   0xb   : > { %p1205_p8 = por %p127_p5, %p126_p3  ;;  %p165_p9 = scmp.lt.s32.totalorder %s1122_s17, 3 }
   0xc   : > { %s1211_s25 = scalar_select %p108_p7, %s1110_s14, %s110_s21  }
   0xd   : > { %p166_p10 = pnand %p902_p6, %p165_p9 }
   0xe   : > { %p200_p11 = scmp.lt.s32.totalorder (!%p166_p10), %s1114_s15, 1  ;;  %v1124_v0 = vmov (!%p166_p10), 1   ;;  %v1125_v1 = vmov (!%p166_p10), 0   ;;  %v1126_v4 = vmov (!%p166_p10), 2   ;;  %v1127_v5 = vmov (!%p166_p10), 3   ;;  %s191_s18 = sand.u32 (!%p166_p10), 1, %s1106_s13  }
   0xf   : > { %169 = sbr.rel (%p166_p10) target bundleno = 524 (0x20c), region = 32  ;;  %1023 = vset.pattern.permute.xlu1 (!%p166_p10), %v1124_v0  ;;  %1022 = vset.pattern.permute.xlu0 (!%p166_p10), %v1125_v1  ;;  %v222_v6 = vlaneseq (!%p166_p10)  ;;  %v906_v10 = vld [vmem:[%s1649_s0 + $0x1] ss:$2 sm:$0x3] (!%p166_p10)  ;;  %s903_s19 = sshll.u32 (!%p166_p10), %s191_s18, 5 }
  0x10   : > { %v206_v11 = vld [vmem:[%s1649_s0] ss:$2 sm:$0x3] (!%p166_p10)  ;;  %s193_s21 = scalar_lea.vmem (!%p166_p10), [#allocation2], %s903_s19  ;;  %s1135_s4 = smov (!%p166_p10), [#allocation2]  }
  0x11   : > { %v223_v7 = vshrl.u32 (!%p166_p10), %v222_v6, 7  ;;  %s809_s23 = sshll.u32 (!%p166_p10), %s193_s21, 4  ;;  %s1048_s5 = sshll.u32 (!%p166_p10), %s1135_s4, 4  ;;  %s1596_s23 = int_to_ptr.vmem [resolvable:$true] %s809_s23  ;;  %s1049_s5 = int_to_ptr.vmem [resolvable:$false] %s1048_s5 }
  0x12   : > { %s1050_s6 = scalar_lea.vmem (!%p166_p10), %s1049_s5, 1024  ;;  %p1051_p1 = scmp.lt.s32.totalorder (!%p166_p10), %s1596_s23, %s1049_s5 }
  0x13   : > { %v224_v8 = vsub.s32 (!%p166_p10), 0, %v223_v7  ;;  %v228_v9 = vsub.s32 (!%p166_p10), 1, %v223_v7  ;;  %v1129_v7 = vmov (!%p166_p10), 2102212464  }
  0x15   : > { %v248_v12 = vrot.slane (!%p166_p10), %v906_v10, %v224_v8  ;;  %v252_v13 = vrot.slane (!%p166_p10), %v906_v10, %v228_v9  ;;  %v225_v15 = vrot.slane (!%p166_p10), %v206_v11, %v224_v8  ;;  %v229_v16 = vrot.slane (!%p166_p10), %v206_v11, %v228_v9 }
  0x16   : > { %s201_s26 = scalar_select %p200_p11, %s1114_s15, 1  ;;  %v1130_v11 = vmov 1326507024  }
  0x18   : > { %s930_s27 = sshll.u32 %s201_s26, 4  ;;  %s931_s26 = sshll.u32 %s1114_s15, 9 }
  0x19   : > { %s204_s30 = scalar_lea.vmem %s1650_s1, %s930_s27  ;;  %s1601_s29 = scalar_lea.hbm %s1652_s3, %s931_s26 }
  0x1a   : > { %v209_v2 = vld [vmem:[%s204_s30] sm:$0xff]  ;;  %v210_v3 = vld [vmem:[%s204_s30 + $0x8] sm:$0xff]  ;;  %s1603_s30 = scalar_lea.sflag [#allocation3], %s191_s18  ;;  %s1044_s15 = scalar_lea.vmem %s1596_s23, 512 }
  0x1b   : > { %237 = vperm.xlu1 %1023, %v209_v2   ;;  %213 = vperm.xlu0 %1022, %v209_v2   ;;  %p1045_p12 = scmp.ne.s32.totalorder %s1596_s23, %s1044_s15  ;;  %p1052_p2 = scmp.lt.s32.totalorder %s1050_s6, %s1044_s15 }
  0x1d   : > { %p1046_p13 = pnand %p1045_p12, %p1198_p4  ;;  %p1053_p3 = por %p1052_p2, %p1051_p1 }
  0x1f   : > { %241 = vperm.xlu1 %1023, %v210_v3   ;;  %218 = vperm.xlu0 %1022, %v210_v3   ;;  %p1047_p0 = pneg %p1046_p13 }
  0x21   : > { %p1054_p5 = pnand %p1053_p3, %p1047_p0 }
  0x23   : > { %1025 = vset.pattern.permute.xlu1 %v1126_v4  ;;  %1024 = vset.pattern.permute.xlu0 %v1126_v4 }
  0x24   : > { %268 = vperm.xlu1 %1025, %v210_v3   ;;  %264 = vperm.xlu0 %1024, %v209_v2  }
  0x28   : > { %1026 = vset.pattern.permute.xlu1 %v1127_v5  ;;  %1027 = vset.pattern.permute.xlu0 %v1127_v5 }
  0x29   : > { %692 = vperm.xlu1 %1026, %v209_v2   ;;  %696 = vperm.xlu0 %1027, %v210_v3   ;;  %v1128_v2 = vmov 920167782  }
  0x9a   : > { %v238_v14 = vpop.permute.xlu1 %237  ;;  %v214_v17 = vpop.permute.xlu0 %213 }
  0x9b   : > { %v255_v18 = vmul.f32 %v248_v12, %v238_v14  ;;  %v256_v19 = vmul.f32 %v252_v13, %v238_v14  ;;  %v232_v20 = vmul.f32 %v225_v15, %v214_v17  ;;  %v233_v21 = vmul.f32 %v229_v16, %v214_v17 }
  0x9d   : > { %v259_v30 = vadd.f32 %v255_v18, %v232_v20  ;;  %v260_v31 = vadd.f32 %v256_v19, %v233_v21 }
  0x9e   : > { %v242_v22 = vpop.permute.xlu1 %241  ;;  %v219_v23 = vpop.permute.xlu0 %218 }
  0x9f   : > { %v257_v24 = vmul.f32 %v248_v12, %v242_v22  ;;  %v258_v25 = vmul.f32 %v252_v13, %v242_v22  ;;  %v234_v26 = vmul.f32 %v225_v15, %v219_v23  ;;  %v235_v27 = vmul.f32 %v229_v16, %v219_v23 }
  0xa1   : > { %v261_v28 = vadd.f32 %v257_v24, %v234_v26  ;;  %v262_v29 = vadd.f32 %v258_v25, %v235_v27 }
  0xa3   : > { %v269_v32 = vpop.permute.xlu1 %268  ;;  %v265_v33 = vpop.permute.xlu0 %264 }
  0xa4   : > { %v1224_v34 = vadd.f32 %v269_v32, %v261_v28  ;;  %v1226_v35 = vadd.f32 %v265_v33, %v259_v30  ;;  %v1228_v36 = vadd.f32 %v265_v33, %v260_v31  ;;  %v1230_v37 = vadd.f32 %v269_v32, %v262_v29 }
  0xa5   : > { %v1131_v30 = vmov 683565275   ;;  %v1132_v32 = vmov 2475754826  }
  0xa6   : > { %v486_v38 = vand.u32 2139095040, %v1224_v34  ;;  %v278_v39 = vand.u32 2139095040, %v1226_v35  ;;  %v382_v40 = vand.u32 2139095040, %v1228_v36  ;;  %v590_v44 = vand.u32 2139095040, %v1230_v37 }
  0xa7   : > { %v275_v48 = vand.u32 2147483647, %v1226_v35  ;;  %v379_v56 = vand.u32 2147483647, %v1228_v36  ;;  %v483_v6 = vand.u32 2147483647, %v1224_v34 }
  0xa8   : > { %v487_v41 = vshrl.u32 %v486_v38, 23  ;;  %v279_v42 = vshrl.u32 %v278_v39, 23  ;;  %v383_v43 = vshrl.u32 %v382_v40, 23  ;;  %v591_v52 = vshrl.u32 %v590_v44, 23 }
  0xa9   : > { %v282_v55 = vand.u32 8388607, %v275_v48  ;;  %v1249_v0 = vand.u32 8388607, %v379_v56  ;;  %v1133_v40 = vmov 2131351028  }
  0xaa   : > { %v915_v45 = vadd.s32 4294967169, %v487_v41  ;;  %v907_v46 = vadd.s32 4294967169, %v279_v42  ;;  %v911_v47 = vadd.s32 4294967169, %v383_v43  ;;  %v919_v59 = vadd.s32 4294967169, %v591_v52 }
  0xab   : > { %v283_v63 = vor.u32 8388608, %v282_v55  ;;  %v387_v16 = vor.u32 8388608, %v1249_v0 }
  0xac   : > { %v493_v49 = vadd.s32 1, %v915_v45  ;;  %v285_v50 = vadd.s32 1, %v907_v46  ;;  %v389_v51 = vadd.s32 1, %v911_v47  ;;  %v1253_v4 = vadd.s32 1, %v919_v59 }
  0xad   : > { %v1263_v15 = vshll.u32 %v283_v63, 8 }
  0xae   : > { %vm494_vm0 = vcmp.gt.s32.totalorder %v493_v49, 0  ;;  %vm286_vm1 = vcmp.gt.s32.totalorder %v285_v50, 0  ;;  %vm390_vm2 = vcmp.gt.s32.totalorder %v389_v51, 0  ;;  %vm598_vm13 = vcmp.gt.s32.totalorder %v1253_v4, 0 }
  0xaf   : > { %v495_v53 = vsel %vm494_vm0, %v493_v49, 0  ;;  %v287_v54 = vsel %vm286_vm1, %v285_v50, 0  ;;  %v391_v58 = vsel %vm390_vm2, %v389_v51, 0 }
  0xb0   : > { %v1240_v57 = vand.u32 31, %v495_v53  ;;  %v289_v60 = vand.u32 31, %v287_v54  ;;  %v1245_v62 = vand.u32 31, %v391_v58  ;;  %v288_v5 = vshrl.u32 %v287_v54, 5 }
  0xb1   : > { %v1260_v13 = vshrl.u32 %v495_v53, 5  ;;  %v1268_v20 = vshrl.u32 %v391_v58, 5 }
  0xb2   : > { %v1243_v61 = vsub.s32 32, %v1240_v57  ;;  %v290_v1 = vsub.s32 32, %v289_v60  ;;  %v301_v8 = vshll.u32 %v1129_v7, %v289_v60  ;;  %v304_v10 = vshll.u32 %v1128_v2, %v289_v60 }
  0xb3   : > { %v394_v14 = vsub.s32 32, %v1245_v62  ;;  %v509_v17 = vshll.u32 %v1129_v7, %v1240_v57  ;;  %v1272_v21 = vshll.u32 %v1128_v2, %v1240_v57  ;;  %vm310_vm3 = vcmp.lt.s32.totalorder %v288_v5, 4 }
  0xb4   : > { %v510_v3 = vshrl.u32 %v1128_v2, %v1243_v61  ;;  %v302_v9 = vshrl.u32 %v1128_v2, %v290_v1  ;;  %v305_v12 = vshrl.u32 %v1130_v11, %v290_v1  ;;  %v1276_v22 = vshrl.u32 %v1130_v11, %v1243_v61 }
  0xb5   : > { %v406_v23 = vshrl.u32 %v1128_v2, %v394_v14  ;;  %v405_v25 = vshll.u32 %v1129_v7, %v1245_v62  ;;  %v408_v26 = vshll.u32 %v1128_v2, %v1245_v62  ;;  %v409_v27 = vshrl.u32 %v1130_v11, %v394_v14 }
  0xb6   : > { %v303_v18 = vor.u32 %v302_v9, %v301_v8  ;;  %v306_v19 = vor.u32 %v305_v12, %v304_v10  ;;  %v1279_v24 = vor.u32 %v510_v3, %v509_v17  ;;  %v292_v31 = vshll.u32 %v1131_v30, %v289_v60 }
  0xb7   : > { %v293_v33 = vshrl.u32 %v1132_v32, %v290_v1  ;;  %v407_v38 = vor.u32 %v406_v23, %v405_v25  ;;  %vm414_vm4 = vcmp.lt.s32.totalorder %v1268_v20, 4  ;;  %v295_v39 = vshll.u32 %v1132_v32, %v289_v60 }
  0xb8   : > { %v316_v28 = vsel %vm310_vm3, %v303_v18, 920167782  ;;  %v320_v29 = vsel %vm310_vm3, %v306_v19, 1326507024  ;;  %v296_v41 = vshrl.u32 %v1133_v40, %v290_v1  ;;  %v291_v42 = vshrl.u32 %v1131_v30, %v290_v1 }
  0xb9   : > { %v294_v43 = vor.u32 %v293_v33, %v292_v31  ;;  %v298_v44 = vshll.u32 %v1133_v40, %v289_v60  ;;  %v299_v45 = vshrl.u32 %v1129_v7, %v290_v1  ;;  %v410_v46 = vor.u32 %v409_v27, %v408_v26 }
  0xba   : > { %v297_v47 = vor.u32 %v296_v41, %v295_v39  ;;  %vm307_vm5 = vcmp.lt.s32.totalorder %v288_v5, 1  ;;  %vm309_vm6 = vcmp.lt.s32.totalorder %v288_v5, 3  ;;  %vm308_vm7 = vcmp.lt.s32.totalorder %v288_v5, 2 }
  0xbb   : > { %v300_v49 = vor.u32 %v299_v45, %v298_v44  ;;  %v311_v50 = vsel %vm307_vm5, %v291_v42, %v294_v43  ;;  %v321_v51 = vsel %vm309_vm6, %v303_v18, %v320_v29  ;;  %v396_v53 = vshll.u32 %v1131_v30, %v1245_v62 }
  0xbc   : > { %v315_v52 = vsel %vm307_vm5, %v294_v43, %v297_v47  ;;  %v397_v54 = vshrl.u32 %v1132_v32, %v394_v14  ;;  %v399_v55 = vshll.u32 %v1132_v32, %v1245_v62  ;;  %v400_v63 = vshrl.u32 %v1133_v40, %v394_v14 }
  0xbd   : > { %v312_v58 = vsel %vm310_vm3, %v300_v49, 2102212464  ;;  %v317_v59 = vsel %vm309_vm6, %v300_v49, %v316_v28  ;;  %v319_v60 = vsel %vm307_vm5, %v297_v47, %v300_v49  ;;  %vm518_vm8 = vcmp.lt.s32.totalorder %v1260_v13, 4 }
  0xbe   : > { %v313_v1 = vsel %vm309_vm6, %v297_v47, %v312_v58  ;;  %v318_v3 = vsel %vm308_vm7, %v315_v52, %v317_v59  ;;  %v322_v8 = vsel %vm308_vm7, %v319_v60, %v321_v51  ;;  %v398_v9 = vor.u32 %v397_v54, %v396_v53 }
  0xbf   : > { %v314_v10 = vsel %vm308_vm7, %v311_v50, %v313_v1  ;;  %v1308_v12 = vmul.u32.u64.low %v1263_v15, %v322_v8  ;;  %v1309_v17 = vmul.u32.u64.high %v1263_v15, %v322_v8, %v1308_v12  ;;  %v401_v18 = vor.u32 %v400_v63, %v399_v55 }
  0xc0   : > { %v514_v19 = vor.u32 %v1276_v22, %v1272_v21  ;;  %v424_v23 = vsel %vm414_vm4, %v410_v46, 1326507024  ;;  %v1316_v25 = vmul.u32.u64.low %v1263_v15, %v318_v3  ;;  %v1317_v26 = vmul.u32.u64.high %v1263_v15, %v318_v3, %v1316_v25 }
  0xc1   : > { %v420_v5 = vsel %vm414_vm4, %v407_v38, 920167782  ;;  %v395_v27 = vshrl.u32 %v1131_v30, %v394_v14  ;;  %v402_v28 = vshll.u32 %v1133_v40, %v1245_v62  ;;  %v403_v29 = vshrl.u32 %v1129_v7, %v394_v14 }
  0xc2   : > { %v330_v21 = vmul.u32 %v1263_v15, %v314_v10  ;;  %vm411_vm9 = vcmp.lt.s32.totalorder %v1268_v20, 1  ;;  %vm412_vm10 = vcmp.lt.s32.totalorder %v1268_v20, 2  ;;  %vm413_vm11 = vcmp.lt.s32.totalorder %v1268_v20, 3 }
  0xc3   : > { %vm332_vm12 = vc.u32 %v1309_v17, %v1316_v25  ;;  %v404_v22 = vor.u32 %v403_v29, %v402_v28  ;;  %v419_v31 = vsel %vm411_vm9, %v398_v9, %v401_v18  ;;  %v425_v33 = vsel %vm413_vm11, %v407_v38, %v424_v23 }
  0xc4   : > { %v333_v62 = vadd.s32 1, %v1317_v26  ;;  %v415_v39 = vsel %vm411_vm9, %v395_v27, %v398_v9  ;;  %v427_v14 = vshll.u32 %v387_v16, 8  ;;  %v490_v15 = vand.u32 8388607, %v483_v6 }
  0xc5   : > { %v416_v41 = vsel %vm414_vm4, %v404_v22, 2102212464  ;;  %v421_v42 = vsel %vm413_vm11, %v404_v22, %v420_v5  ;;  %v423_v43 = vsel %vm411_vm9, %v401_v18, %v404_v22  ;;  %v501_v44 = vshrl.u32 %v1132_v32, %v1243_v61 }
  0xc6   : > { %v334_v38 = vsel %vm332_vm12, %v333_v62, %v1317_v26  ;;  %v422_v45 = vsel %vm412_vm10, %v419_v31, %v421_v42  ;;  %v426_v0 = vsel %vm412_vm10, %v423_v43, %v425_v33  ;;  %v500_v16 = vshll.u32 %v1131_v30, %v1240_v57 }
  0xc7   : > { %v335_v46 = vadd.s32 %v334_v38, %v330_v21  ;;  %v417_v47 = vsel %vm413_vm11, %v401_v18, %v416_v41  ;;  %v1354_v49 = vmul.u32.u64.low %v427_v14, %v426_v0  ;;  %v1355_v50 = vmul.u32.u64.high %v427_v14, %v426_v0, %v1354_v49 }
  0xc8   : > { %v524_v51 = vsel %vm518_vm8, %v1279_v24, 920167782  ;;  %v1361_v52 = vmul.u32.u64.low %v427_v14, %v422_v45  ;;  %v1362_v53 = vmul.u32.u64.high %v427_v14, %v422_v45, %v1361_v52  ;;  %v502_v55 = vor.u32 %v501_v44, %v500_v16 }
  0xc9   : > { %v336_v54 = vadd.s32 536870912, %v335_v46  ;;  %v503_v58 = vshll.u32 %v1132_v32, %v1240_v57  ;;  %v504_v59 = vshrl.u32 %v1133_v40, %v1243_v61  ;;  %v528_v60 = vsel %vm518_vm8, %v514_v19, 1326507024 }
  0xca   : > { %v418_v63 = vsel %vm412_vm10, %v415_v39, %v417_v47  ;;  %v506_v1 = vshll.u32 %v1133_v40, %v1240_v57  ;;  %v507_v3 = vshrl.u32 %v1129_v7, %v1243_v61  ;;  %vm436_vm14 = vc.u32 %v1355_v50, %v1361_v52 }
  0xcb   : > { %v1377_v8 = vshrl.u32 %v336_v54, 30  ;;  %v491_v9 = vor.u32 8388608, %v490_v15  ;;  %v505_v10 = vor.u32 %v504_v59, %v503_v58  ;;  %v437_v12 = vadd.s32 1, %v1362_v53 }
  0xcc   : > { %v508_v18 = vor.u32 %v507_v3, %v506_v1  ;;  %vm515_vm15 = vcmp.lt.s32.totalorder %v1260_v13, 1  ;;  %vm517_vm0 = vcmp.lt.s32.totalorder %v1260_v13, 3  ;;  %v434_v57 = vmul.u32 %v427_v14, %v418_v63 }
  0xcd   : > { %v338_v20 = vshll.u32 %v1377_v8, 30  ;;  %v523_v19 = vsel %vm515_vm15, %v502_v55, %v505_v10  ;;  %v529_v23 = vsel %vm517_vm0, %v1279_v24, %v528_v60  ;;  %v438_v26 = vsel %vm436_vm14, %v437_v12, %v1362_v53 }
  0xce   : > { %v520_v5 = vsel %vm518_vm8, %v508_v18, 2102212464  ;;  %v525_v27 = vsel %vm517_vm0, %v508_v18, %v524_v51  ;;  %v527_v28 = vsel %vm515_vm15, %v505_v10, %v508_v18  ;;  %v439_v21 = vadd.s32 %v438_v26, %v434_v57 }
  0xcf   : > { %v1397_v29 = vsub.s32 %v335_v46, %v338_v20  ;;  %v499_v22 = vshrl.u32 %v1131_v30, %v1243_v61  ;;  %vm516_vm1 = vcmp.lt.s32.totalorder %v1260_v13, 2  ;;  %v599_v24 = vsel %vm598_vm13, %v1253_v4, 0 }
  0xd0   : > { %v526_v31 = vsel %vm516_vm1, %v523_v19, %v525_v27  ;;  %v530_v33 = vsel %vm516_vm1, %v527_v28, %v529_v23  ;;  %v531_v62 = vshll.u32 %v491_v9, 8  ;;  %v440_v14 = vadd.s32 536870912, %v439_v21 }
  0xd1   : > { %v341_v39 = vsub.s32 0, %v1397_v29  ;;  %v519_v15 = vsel %vm515_vm15, %v499_v22, %v502_v55  ;;  %v521_v61 = vsel %vm517_vm0, %v505_v10, %v520_v5  ;;  %v601_v45 = vand.u32 31, %v599_v24 }
  0xd2   : > { %v1414_v41 = vmul.u32.u64.low %v531_v62, %v530_v33  ;;  %v1415_v42 = vmul.u32.u64.high %v531_v62, %v530_v33, %v1414_v41  ;;  %v1417_v4 = vmul.u32.u64.low %v531_v62, %v526_v31  ;;  %v1418_v43 = vmul.u32.u64.high %v531_v62, %v526_v31, %v1417_v4 }
  0xd3   : > { %v1421_v44 = vshrl.u32 %v440_v14, 30  ;;  %v908_v38 = vmin.u32 %v341_v39, %v1397_v29  ;;  %v522_v0 = vsel %vm516_vm1, %v519_v15, %v521_v61  ;;  %v602_v53 = vsub.s32 32, %v601_v45 }
  0xd4   : > { %vm540_vm2 = vc.u32 %v1415_v42, %v1417_v4  ;;  %v541_v46 = vadd.s32 1, %v1418_v43  ;;  %v538_v51 = vmul.u32 %v531_v62, %v522_v0  ;;  %v1436_v1 = vshrl.u32 %v599_v24, 5 }
  0xd5   : > { %v442_v16 = vshll.u32 %v1421_v44, 30  ;;  %v343_v47 = vclz %v908_v38  ;;  %v614_v63 = vshrl.u32 %v1128_v2, %v602_v53  ;;  %v613_v3 = vshll.u32 %v1129_v7, %v601_v45 }
  0xd6   : > { %v542_v54 = vsel %vm540_vm2, %v541_v46, %v1418_v43  ;;  %v617_v10 = vshrl.u32 %v1130_v11, %v602_v53  ;;  %v587_v18 = vand.u32 2147483647, %v1230_v37  ;;  %v605_v20 = vshrl.u32 %v1132_v32, %v602_v53 }
  0xd7   : > { %v1430_v49 = vsub.s32 %v439_v21, %v442_v16  ;;  %v543_v58 = vadd.s32 %v542_v54, %v538_v51  ;;  %v909_v59 = vadd.s32 4294967294, %v343_v47  ;;  %v608_v19 = vshrl.u32 %v1133_v40, %v602_v53 }
  0xd8   : > { %v611_v23 = vshrl.u32 %v1129_v7, %v602_v53  ;;  %v615_v26 = vor.u32 %v614_v63, %v613_v3  ;;  %v616_v5 = vshll.u32 %v1128_v2, %v601_v45  ;;  %vm622_vm4 = vcmp.lt.s32.totalorder %v1436_v1, 4 }
  0xd9   : > { %v445_v55 = vsub.s32 0, %v1430_v49  ;;  %v544_v60 = vadd.s32 536870912, %v543_v58  ;;  %vm910_vm3 = vcmp.lt.s32.totalorder %v909_v59, 0  ;;  %v604_v11 = vshll.u32 %v1131_v30, %v601_v45 }
  0xda   : > { %v607_v28 = vshll.u32 %v1132_v32, %v601_v45  ;;  %v610_v21 = vshll.u32 %v1133_v40, %v601_v45  ;;  %v1452_v22 = vsel %vm910_vm3, 0, %v909_v59  ;;  %v594_v7 = vand.u32 8388607, %v587_v18 }
  0xdb   : > { %v912_v13 = vmin.u32 %v445_v55, %v1430_v49  ;;  %v1440_v12 = vshrl.u32 %v544_v60, 30  ;;  %v618_v31 = vor.u32 %v617_v10, %v616_v5  ;;  %v606_v2 = vor.u32 %v605_v20, %v604_v11 }
  0xdc   : > { %v609_v33 = vor.u32 %v608_v19, %v607_v28  ;;  %v612_v62 = vor.u32 %v611_v23, %v610_v21  ;;  %v628_v39 = vsel %vm622_vm4, %v615_v26, 920167782  ;;  %v351_v32 = vsub.s32 4294967266, %v1452_v22 }
  0xdd   : > { %v447_v9 = vclz %v912_v13  ;;  %v546_v27 = vshll.u32 %v1440_v12, 30  ;;  %v595_v61 = vor.u32 8388608, %v594_v7  ;;  %vm619_vm6 = vcmp.lt.s32.totalorder %v1436_v1, 1 }
  0xde   : > { %vm621_vm7 = vcmp.lt.s32.totalorder %v1436_v1, 3  ;;  %v632_v41 = vsel %vm622_vm4, %v618_v31, 1326507024  ;;  %v627_v43 = vsel %vm619_vm6, %v606_v2, %v609_v33  ;;  %v624_v16 = vsel %vm622_vm4, %v612_v62, 2102212464 }
  0xdf   : > { %v913_v57 = vadd.s32 4294967294, %v447_v9  ;;  %v1454_v24 = vsub.s32 %v543_v58, %v546_v27  ;;  %v629_v38 = vsel %vm621_vm7, %v612_v62, %v628_v39  ;;  %v631_v46 = vsel %vm619_vm6, %v609_v33, %v612_v62 }
  0xe0   : > { %v331_v47 = vadd.s32 %v1316_v25, %v1309_v17  ;;  %v352_v51 = vadd.s32 127, %v351_v32  ;;  %v603_v54 = vshrl.u32 %v1131_v30, %v602_v53  ;;  %vm620_vm8 = vcmp.lt.s32.totalorder %v1436_v1, 2 }
  0xe1   : > { %vm914_vm5 = vcmp.lt.s32.totalorder %v913_v57, 0  ;;  %v549_v14 = vsub.s32 0, %v1454_v24  ;;  %v630_v58 = vsel %vm620_vm8, %v627_v43, %v629_v38  ;;  %v633_v59 = vsel %vm621_vm7, %v615_v26, %v632_v41 }
  0xe2   : > { %v450_v40 = vsel %vm914_vm5, 0, %v913_v57  ;;  %v635_v13 = vshll.u32 %v595_v61, 8  ;;  %v347_v60 = vsub.s32 32, %v1452_v22  ;;  %v623_v63 = vsel %vm619_vm6, %v603_v54, %v606_v2 }
  0xe3   : > { %v916_v15 = vmin.u32 %v549_v14, %v1454_v24  ;;  %v455_v45 = vsub.s32 4294967266, %v450_v40  ;;  %v625_v17 = vsel %vm621_vm7, %v609_v33, %v624_v16  ;;  %v634_v30 = vsel %vm620_vm8, %v631_v46, %v633_v59 }
  0xe4   : > { %v1490_v53 = vmul.u32.u64.low %v635_v13, %v634_v30  ;;  %v1491_v3 = vmul.u32.u64.high %v635_v13, %v634_v30, %v1490_v53  ;;  %v353_v9 = vshll.u32 %v352_v51, 23  ;;  %v451_v19 = vsub.s32 32, %v450_v40 }
  0xe5   : > { %v551_v0 = vclz %v916_v15  ;;  %v456_v25 = vadd.s32 127, %v455_v45  ;;  %v1493_v20 = vmul.u32.u64.low %v635_v13, %v630_v58  ;;  %v1494_v57 = vmul.u32.u64.high %v635_v13, %v630_v58, %v1493_v20 }
  0xe6   : > { %v349_v26 = vshrl.u32 %v331_v47, %v347_v60  ;;  %v626_v27 = vsel %vm620_vm8, %v623_v63, %v625_v17  ;;  %v1134_v11 = vmov 0.0   ;;  %v435_v28 = vadd.s32 %v1361_v52, %v1355_v50 }
  0xe7   : > { %v917_v55 = vadd.s32 4294967294, %v551_v0  ;;  %776 = vmatprep.mubr.f32.mxu0 %v1134_v11  ;;  %782 = vmatprep.mubr.f32.mxu1 %v1134_v11  ;;  %v457_v21 = vshll.u32 %v456_v25, 23  ;;  %vm644_vm10 = vc.u32 %v1491_v3, %v1493_v20  ;;  %v348_v31 = vshll.u32 %v1397_v29, %v1452_v22 }
  0xe8   : > { %v354_v2 = vor.u32 4788187, %v353_v9  ;;  %v539_v33 = vadd.s32 %v1417_v4, %v1415_v42  ;;  %v645_v1 = vadd.s32 1, %v1494_v57  ;;  %v453_v62 = vshrl.u32 %v435_v28, %v451_v19 }
  0xe9   : > { %vm918_vm9 = vcmp.lt.s32.totalorder %v917_v55, 0  ;;  %v642_v14 = vmul.u32 %v635_v13, %v626_v27  ;;  %v350_v32 = vor.u32 %v349_v26, %v348_v31  ;;  %v452_v52 = vshll.u32 %v1430_v49, %v450_v40 }
  0xea   : > { %v554_v10 = vsel %vm918_vm9, 0, %v917_v55  ;;  %v646_v50 = vsel %vm644_vm10, %v645_v1, %v1494_v57  ;;  %v458_v61 = vor.u32 4788187, %v457_v21  ;;  %v355_v43 = vand.u32 2147483647, %v354_v2 }
  0xeb   : > { %v559_v23 = vsub.s32 4294967266, %v554_v10  ;;  %v555_v5 = vsub.s32 32, %v554_v10  ;;  %v647_v41 = vadd.s32 %v646_v50, %v642_v14  ;;  %v556_v29 = vshll.u32 %v1454_v24, %v554_v10 }
  0xec   : > { %v454_v38 = vor.u32 %v453_v62, %v452_v52  ;;  %v357_v42 = vcvt.s32.f32 %v350_v32  ;;  %v459_v0 = vand.u32 2147483647, %v458_v61  ;;  %vm277_vm11 = vcmp.lt.s32.totalorder %v1226_v35, 0 }
  0xed   : > { %v560_v7 = vadd.s32 127, %v559_v23  ;;  %v557_v15 = vshrl.u32 %v539_v33, %v555_v5  ;;  %v648_v45 = vadd.s32 536870912, %v647_v41  ;;  %vm1519_vm12 = vcmp.le.f32.partialorder %v275_v48, 0.7853982 }
  0xee   : > { %v358_v46 = vmul.f32 %v357_v42, %v355_v43  ;;  %v461_v51 = vcvt.s32.f32 %v454_v38  ;;  %vm381_vm13 = vcmp.lt.s32.totalorder %v1228_v36, 0  ;;  %vm485_vm14 = vcmp.lt.s32.totalorder %v1224_v34, 0 }
  0xef   : > { %v561_v39 = vshll.u32 %v560_v7, 23  ;;  %v558_v4 = vor.u32 %v557_v15, %v556_v29  ;;  %v1511_v16 = vshrl.u32 %v648_v45, 30  ;;  %vm1534_vm15 = vcmp.le.f32.partialorder %v379_v56, 0.7853982 }
  0xf0   : > { %v462_v49 = vmul.f32 %v461_v51, %v459_v0  ;;  %v359_v58 = vxor.u32 2147483648, %v358_v46  ;;  %vm1543_vm1 = vcmp.le.f32.partialorder %v483_v6, 0.7853982  ;;  %v643_v5 = vadd.s32 %v1493_v20, %v1491_v3 }
  0xf1   : > { %v562_v22 = vor.u32 4788187, %v561_v39  ;;  %v650_v54 = vshll.u32 %v1511_v16, 30  ;;  %v565_v55 = vcvt.s32.f32 %v558_v4  ;;  %v361_v28 = vsub.s32 4, %v1377_v8 }
  0xf2   : > { %v463_v24 = vxor.u32 2147483648, %v462_v49  ;;  %v360_v63 = vsel %vm277_vm11, %v359_v58, %v358_v46  ;;  %v465_v21 = vsub.s32 4, %v1421_v44  ;;  %v569_v6 = vsub.s32 4, %v1440_v12 }
  0xf3   : > { %v563_v47 = vand.u32 2147483647, %v562_v22  ;;  %v651_v40 = vsub.s32 %v647_v41, %v650_v54  ;;  %v363_v53 = vsel %vm1519_vm12, %v1226_v35, %v360_v63  ;;  %v362_v3 = vsel %vm277_vm11, %v361_v28, %v1377_v8  ;;  %v697_v28 = vpop.permute.xlu0 %696 }
  0xf4   : > { %v464_v9 = vsel %vm381_vm13, %v463_v24, %v462_v49  ;;  %1028 = vcosq.f32 %v363_v53  ;;  %v466_v20 = vsel %vm381_vm13, %v465_v21, %v1421_v44  ;;  %v570_v62 = vsel %vm485_vm14, %v569_v6, %v1440_v12 }
  0xf5   : > { %v566_v59 = vmul.f32 %v565_v55, %v563_v47  ;;  %v653_v13 = vsub.s32 0, %v651_v40  ;;  %v467_v19 = vsel %vm1534_vm15, %v1228_v36, %v464_v9  ;;  %1030 = vsinq.f32 %v363_v53 }
  0xf6   : > { %1032 = vcosq.f32 %v467_v19  ;;  %v364_v14 = vsel %vm1519_vm12, 0, %v362_v3  ;;  %v468_v32 = vsel %vm1534_vm15, 0, %v466_v20  ;;  %v572_v8 = vsel %vm1543_vm1, 0, %v570_v62  ;;  %v703_v62 = vld [vmem:[%s1651_s2] sm:$0xff] }
  0xf7   : > { %v920_v60 = vmin.u32 %v653_v13, %v651_v40  ;;  %v567_v17 = vxor.u32 2147483648, %v566_v59  ;;  %v673_v44 = vsub.s32 4, %v1511_v16  ;;  %v368_v43 = vadd.s32 3, %v364_v14 }
  0xf8   : > { %v472_v29 = vadd.s32 3, %v468_v32  ;;  %v576_v22 = vadd.s32 3, %v572_v8  ;;  %vm589_vm2 = vcmp.lt.s32.totalorder %v1230_v37, 0  ;;  %vm1574_vm3 = vcmp.le.f32.partialorder %v587_v18, 0.7853982 }
  0xf9   : > { %v655_v30 = vclz %v920_v60  ;;  %v568_v57 = vsel %vm485_vm14, %v567_v17, %v566_v59  ;;  %v674_v46 = vsel %vm589_vm2, %v673_v44, %v1511_v16  ;;  %v369_v51 = vand.u32 3, %v368_v43 }
  0xfa   : > { %v571_v56 = vsel %vm1543_vm1, %v1224_v34, %v568_v57  ;;  %v473_v54 = vand.u32 3, %v472_v29  ;;  %v577_v58 = vand.u32 3, %v576_v22  ;;  %v676_v18 = vsel %vm1574_vm3, 0, %v674_v46 }
  0xfb   : > { %v921_v10 = vadd.s32 4294967294, %v655_v30  ;;  %1034 = vcosq.f32 %v571_v56  ;;  %vm371_vm4 = vcmp.eq.s32.totalorder %v369_v51, 0  ;;  %vm374_vm5 = vcmp.eq.s32.totalorder %v369_v51, 2 }
  0xfc   : > { %1036 = vsinq.f32 %v571_v56  ;;  %vm475_vm6 = vcmp.eq.s32.totalorder %v473_v54, 0  ;;  %vm478_vm7 = vcmp.eq.s32.totalorder %v473_v54, 2  ;;  %vm579_vm8 = vcmp.eq.s32.totalorder %v577_v58, 0  ;;  %v693_v56 = vpop.permute.xlu1 %692 }
  0xfd   : > { %vm922_vm0 = vcmp.lt.s32.totalorder %v921_v10, 0  ;;  %1038 = vsinq.f32 %v467_v19  ;;  %vm582_vm9 = vcmp.eq.s32.totalorder %v577_v58, 2  ;;  %v680_v16 = vadd.s32 3, %v676_v18 }
  0xfe   : > { %v658_v26 = vsel %vm922_vm0, 0, %v921_v10  ;;  %v1029_v52 = vpop.eup %1028  ;;  %vm370_vm10 = vcmp.lt.s32.totalorder %v369_v51, 2  ;;  %vm578_vm11 = vcmp.lt.s32.totalorder %v577_v58, 2  ;;  %vm474_vm12 = vcmp.lt.s32.totalorder %v473_v54, 2 }
  0xff   : > { %v659_v27 = vsub.s32 32, %v658_v26  ;;  %v663_v11 = vsub.s32 4294967266, %v658_v26  ;;  %v660_v7 = vshll.u32 %v651_v40, %v658_v26  ;;  %v1031_v41 = vpop.eup %1030  ;;  %v375_v40 = vxor.u32 2147483648, %v1029_v52 }
 0x100   : > { %v1033_v12 = vpop.eup %1032  ;;  %v372_v49 = vxor.u32 2147483648, %v1031_v41  ;;  %v681_v48 = vand.u32 3, %v680_v16  ;;  %vm367_vm13 = vweird.f32 %v1226_v35  ;;  %vm575_vm14 = vweird.f32 %v1224_v34 }
 0x101   : > { %v661_v31 = vshrl.u32 %v643_v5, %v659_v27  ;;  %v664_v2 = vadd.s32 127, %v663_v11  ;;  %v479_v60 = vxor.u32 2147483648, %v1033_v12  ;;  %v376_v17 = vsel %vm374_vm5, %v375_v40, %v1031_v41 }
 0x102   : > { %v373_v63 = vsel %vm371_vm4, %v1029_v52, %v372_v49  ;;  %vm471_vm15 = vweird.f32 %v1228_v36  ;;  %vm686_vm0 = vcmp.eq.s32.totalorder %v681_v48, 2  ;;  %vm683_vm1 = vcmp.eq.s32.totalorder %v681_v48, 0 }
 0x103   : > { %v662_v33 = vor.u32 %v661_v31, %v660_v7  ;;  %v665_v1 = vshll.u32 %v664_v2, 23  ;;  %v377_v10 = vsel %vm370_vm10, %v373_v63, %v376_v17  ;;  %vm705_vm4 = vcmask 130048  }
 0x104   : > { %v378_v5 = vsel %vm367_vm13, nan, %v377_v10 }
 0x105   : > { %v666_v39 = vor.u32 4788187, %v665_v1  ;;  %v669_v50 = vcvt.s32.f32 %v662_v33  ;;  %v1035_v45 = vpop.eup %1034  ;;  %v699_v31 = vmul.f32 %v693_v56, %v378_v5 }
 0x106   : > { %v1037_v42 = vpop.eup %1036  ;;  %v583_v13 = vxor.u32 2147483648, %v1035_v45 }
 0x107   : > { %v667_v15 = vand.u32 2147483647, %v666_v39  ;;  %v1039_v47 = vpop.eup %1038  ;;  %v580_v59 = vxor.u32 2147483648, %v1037_v42  ;;  %v704_v39 = vld [vmem:[%s1651_s2 + $0x8] sm:$0xff] }
 0x108   : > { %v476_v24 = vxor.u32 2147483648, %v1039_v47  ;;  %v584_v25 = vsel %vm582_vm9, %v583_v13, %v1037_v42  ;;  %v480_v9 = vsel %vm478_vm7, %v479_v60, %v1039_v47 }
 0x109   : > { %v670_v61 = vmul.f32 %v669_v50, %v667_v15  ;;  %v581_v30 = vsel %vm579_vm8, %v1035_v45, %v580_v59 }
 0x10a   : > { %v477_v53 = vsel %vm475_vm6, %v1033_v12, %v476_v24  ;;  %v585_v57 = vsel %vm578_vm11, %v581_v30, %v584_v25 }
 0x10b   : > { %v671_v38 = vxor.u32 2147483648, %v670_v61  ;;  %v481_v19 = vsel %vm474_vm12, %v477_v53, %v480_v9  ;;  %v586_v27 = vsel %vm575_vm14, nan, %v585_v57 }
 0x10c   : > { %v482_v21 = vsel %vm471_vm15, nan, %v481_v19  ;;  %v701_v33 = vmul.f32 %v697_v28, %v586_v27 }
 0x10d   : > { %v672_v0 = vsel %vm589_vm2, %v671_v38, %v670_v61  ;;  %vm682_vm2 = vcmp.lt.s32.totalorder %v681_v48, 2  ;;  %v700_v35 = vmul.f32 %v693_v56, %v482_v21 }
 0x10e   : > { %v675_v55 = vsel %vm1574_vm3, %v1230_v37, %v672_v0  ;;  %vm679_vm3 = vweird.f32 %v1230_v37  ;;  %v934_v36 = vpack.c.bf16 %v701_v33, %v699_v31 }
 0x10f   : > { %1040 = vcosq.f32 %v675_v55 }
 0x110   : > { %1042 = vsinq.f32 %v675_v55 }
 0x119   : > { %v1041_v23 = vpop.eup %1040 }
 0x11a   : > { %v1043_v26 = vpop.eup %1042  ;;  %v687_v11 = vxor.u32 2147483648, %v1041_v23 }
 0x11b   : > { %v684_v6 = vxor.u32 2147483648, %v1043_v26 }
 0x11c   : > { %v688_v7 = vsel %vm686_vm0, %v687_v11, %v1043_v26 }
 0x11d   : > { %v685_v2 = vsel %vm683_vm1, %v1041_v23, %v684_v6 }
 0x11e   : > { %v689_v34 = vsel %vm682_vm2, %v685_v2, %v688_v7 }
 0x11f   : > { %v690_v1 = vsel %vm679_vm3, nan, %v689_v34 }
 0x120   : > { %v702_v3 = vmul.f32 %v697_v28, %v690_v1 }
 0x122   : > { %v932_v20 = vpack.c.bf16 %v702_v3, %v700_v35 }
 0x124   : > { %933 = vmatprep.subr.bf16.mxu0 %v932_v20  ;;  %936 = vmatprep.subr.bf16.mxu1 %v932_v20 }
 0x125   : > { %935 = vmatpush1.bf16.msra.mxu0 %v934_v36  ;;  %937 = vmatpush1.bf16.msra.mxu1 %v934_v36 }
 0x128   : > { %923 = vmatmul.mubr.msk.f32.vlgmr.msra.gmra.mrb[0].mxu0 %vm705_vm4, %v703_v62  ;;  %924 = vmatmul.mubr.msk.f32.vlgmr.msra.gmra.mrb[0].mxu1 %vm705_vm4, %v704_v39 }
 0x1fb   : > { %v778_v37 = vpop.f32.mrb[0].mxu0  ;;  %v784_v14 = vpop.f32.mrb[0].mxu1 }
 0x1fc   : > { %789 = vst [vmem:[%s193_s21] sm:$0xff] %v778_v37  ;;  %791 = vst [vmem:[%s193_s21 + $0x10] sm:$0xff] %v784_v14  ;;  %v780_v32 = vpop.f32.mrb[1].mxu0  ;;  %v786_v15 = vpop.f32.mrb[1].mxu1 }
 0x1fd   : > { %790 = vst [vmem:[%s193_s21 + $0x8] sm:$0xff] %v780_v32  ;;  %792 = vst [vmem:[%s193_s21 + $0x18] sm:$0xff] %v786_v15 }
 0x1fe   : > { %1057 = shalt.err (!%p1054_p5)
}
 0x1ff   : > { %s1058_s7 = scalar_lea.hbm %s1601_s29, 512  ;;  %s1062_s10 = scalar_lea.hbm %s1652_s3, 1024 }
 0x200   : > { %p1059_p6 = scmp.ne.s32.totalorder %s1601_s29, %s1058_s7  ;;  %p1063_p10 = scmp.lt.u32.totalorder %s1601_s29, %s1652_s3 }
 0x201   : > { %p1064_p11 = scmp.lt.u32.totalorder %s1062_s10, %s1058_s7  ;;  %p1066_p13 = scmp.lt.u32.totalorder %s1058_s7, %s1601_s29 }
 0x202   : > { %p1060_p7 = pnand %p1059_p6, %p1198_p4 }
 0x203   : > { %p1065_p12 = por %p1064_p11, %p1063_p10 }
 0x204   : > { %p1061_p9 = pneg %p1060_p7 }
 0x205   : > { %p1067_p0 = por %p1066_p13, %p1065_p12 }
 0x207   : > { %p1068_p1 = pnand %p1067_p0, %p1061_p9 }
 0x209   : > { %1071 = shalt.err (!%p1068_p1)
}
 0x20a   : > { %s1136_s19 = smov 256   ;;  %s1137_s21 = smov 16  }
 0x20b   : > { %954 = dma.vmem_to_hbm [thread:$0]  (%p1198_p4), %s1596_s23, 512, %s1601_s29, %s1603_s30, %s1136_s19, %s1136_s19, %s1137_s21  }
 0x20c PF: > { %p960_p2 = scmp.ge.s32.totalorder %s1122_s17, 2  ;;  %s824_s26 = sand.u32 1, %s1102_s12  }
 0x20d   : > { %s825_s27 = scalar_lea.sflag [#allocation3], %s824_s26 }
 0x20e   : > { %p957_p3 = pnand %p960_p2, %p1205_p8 }
 0x210   : > { %1097 = dma.done.wait (!%p957_p3), %s825_s27, 512  }
 0x211   : > { %1099 = vsyncadd (!%p957_p3), %s825_s27, 4294966784  ;;  %s16_s17 = sadd.s32 1, %s1122_s17   ;;  %s1663_s12 = smov %s1106_s13 }
 0x212   : > { %p13_p5 = scmp.ge.s32.totalorder %s16_s17, 4   ;;  %s1664_s13 = smov %s1110_s14 }
 0x213   : > { %s1665_s14 = smov %s1211_s25  ;;  %s1666_s15 = smov %s1118_s16 }
 0x214   : > { %s1667_s16 = smov %s1669_s20  ;;  %15 = sbr.rel (!%p13_p5) target bundleno = 4 (0x4), region = 71 }
 0x21b   :  { %830 = vsyncpa [#allocation3], 1 }
 0x21c   :  { %832 = vsyncpa [#allocation3 + $0x1], 1 }

</bundles_post_ra>
